<compile_context>
chip_gen: v7x
topology: tpu7x:2x2x1
jax: 0.10.0
libtpu: 0.0.40
codegen_flags: <defaults>
</compile_context>

<pallas_src>
import functools

import jax
import jax.numpy as jnp
import numpy as np
from jax.experimental import pallas as pl
from jax.experimental.pallas import tpu as pltpu

NUM_ACTIONS = 3


# ----------------------------------------------------------------------------
# Pallas kernel (one batch element per grid step)
# ----------------------------------------------------------------------------
def _seq2grid_kernel(seq_ref, mlast_ref, mrow0_ref, w1_ref, b1_ref, w2_ref,
                     b2_ref, g_ref, act_ref, c_ref, *, W):
    """Refs:
      seq_ref  : (1, S, E)  tokens for this batch element
      mlast_ref: (1, HW)    1.0 where (k % W) == W-1 else 0.0   (last column mask)
      mrow0_ref: (1, HW)    1.0 where k <  W         else 0.0   (first row mask)
      w1,b1,w2,b2 : action-decoder parameters
      g_ref    : (1, HW, E) output grid (H*W flattened)
      act_ref  : (S, 3)     VMEM scratch -- softmax(action logits)
      c_ref    : (S, HW)    VMEM scratch -- per-step weighted superposition rows
    """
    _, S, _ = seq_ref.shape

    seq_b = seq_ref[0].astype(jnp.float32)                      # (S, E)

    # ---- action decoder, hoisted out of the recurrence (MXU) ----------------
    hid = jnp.dot(seq_b, w1_ref[...], preferred_element_type=jnp.float32)
    hid = hid + b1_ref[...]
    hid = hid * jax.nn.sigmoid(hid)                             # SiLU
    logits = jnp.dot(hid, w2_ref[...], preferred_element_type=jnp.float32)
    logits = logits + b2_ref[...]
    logits = logits - jnp.max(logits, axis=-1, keepdims=True)
    expd = jnp.exp(logits)
    act_ref[...] = expd / jnp.sum(expd, axis=-1, keepdims=True)  # (S, 3)

    # ---- flattened superposition state (1, HW) -------------------------------
    mlast = mlast_ref[...]            # 1.0 at w == W-1
    mrow0 = mrow0_ref[...]            # 1.0 at row h == 0
    not_last = 1.0 - mlast
    not_row0 = 1.0 - mrow0
    T0 = mlast * mrow0                # T[0, W-1] = 1
    rs0 = T0                          # rows_sums[h] stored at lane h*W + (W-1)

    def body(i, carry):
        T, rs = carry
        t = S - 1 - i                                           # reverse order
        a_row = act_ref[pl.ds(t, 1), :]                         # (1, 3)
        a0 = a_row[:, 0:1]
        a1 = a_row[:, 1:2]
        a2 = a_row[:, 2:3]

        # row of C for the post-loop matmul:  C[t] = (a0 + a1) * T
        c_ref[pl.ds(t, 1), :] = (a0 + a1) * T

        # devolve: grouped conv2d == masked lane shift of the flat T
        t_shift = jnp.roll(T, -1, axis=1) * not_last            # T[h, w+1], 0 at w=W-1
        sums = a1 * (jnp.roll(rs, W, axis=1) * not_row0)        # a1 * rs[h-1] at w=W-1
        T_new = a2 * T + a0 * t_shift + sums
        rs_new = (a0 + a2) * rs + sums
        return (T_new, rs_new)

    # S-1 devolve steps; the final time step (t == 0) only updates C (the
    # PyTorch loop breaks before its devolve, so we peel it -- no dead work).
    steps = S - 1
    if steps > 0:
        T_last, _ = jax.lax.fori_loop(0, steps, body, (T0, rs0),
                                      unroll=min(steps, 8))
    else:
        T_last = T0
    a_row = act_ref[pl.ds(0, 1), :]
    c_ref[pl.ds(0, 1), :] = (a_row[:, 0:1] + a_row[:, 1:2]) * T_last

    # ---- single MXU contraction:  G = C^T @ seq_b   ((HW,S) @ (S,E)) ---------
    g = jax.lax.dot_general(
        c_ref[...], seq_b,
        dimension_numbers=(((0,), (0,)), ((), ())),
        preferred_element_type=jnp.float32)                     # (HW, E)
    g_ref[...] = g[None].astype(g_ref.dtype)


# ----------------------------------------------------------------------------
# Wrapper
# ----------------------------------------------------------------------------
def seq2grid_pallas(seq, w1, b1, w2, b2, num_lists=10, list_size=10):
    B, S, E = seq.shape
    U = w1.shape[1]
    H, W = num_lists, list_size
    HW = H * W

    seq_f = seq.astype(jnp.float32)
    b1_2d = b1.reshape(1, U).astype(jnp.float32)
    b2_2d = b2.reshape(1, NUM_ACTIONS).astype(jnp.float32)

    # static lane masks for the flattened (H*W) superposition layout
    lane = np.arange(HW)
    mask_last = jnp.asarray(((lane % W) == (W - 1)).astype(np.float32).reshape(1, HW))
    mask_row0 = jnp.asarray((lane < W).astype(np.float32).reshape(1, HW))

    kernel = functools.partial(_seq2grid_kernel, W=W)
    g_flat = pl.pallas_call(
        kernel,
        out_shape=jax.ShapeDtypeStruct((B, HW, E), jnp.float32),
        grid=(B,),
        in_specs=[
            pl.BlockSpec((1, S, E), lambda b: (b, 0, 0)),
            pl.BlockSpec((1, HW), lambda b: (0, 0)),
            pl.BlockSpec((1, HW), lambda b: (0, 0)),
            pl.BlockSpec((E, U), lambda b: (0, 0)),
            pl.BlockSpec((1, U), lambda b: (0, 0)),
            pl.BlockSpec((U, NUM_ACTIONS), lambda b: (0, 0)),
            pl.BlockSpec((1, NUM_ACTIONS), lambda b: (0, 0)),
        ],
        out_specs=pl.BlockSpec((1, HW, E), lambda b: (b, 0, 0)),
        scratch_shapes=[
            pltpu.VMEM((S, NUM_ACTIONS), jnp.float32),   # actions
            pltpu.VMEM((S, HW), jnp.float32),            # C matrix rows
        ],
        compiler_params=pltpu.CompilerParams(
            dimension_semantics=("parallel",)),
    )(seq_f, mask_last, mask_row0,
      w1.astype(jnp.float32), b1_2d, w2.astype(jnp.float32), b2_2d)

    # free dim-split back to the module's (B, H, W, E) layout
    return g_flat.reshape(B, H, W, E)


# ----------------------------------------------------------------------------
# Pure-JAX reference (literal translation of the PyTorch module)
# ----------------------------------------------------------------------------
def seq2grid_ref(seq, w1, b1, w2, b2, num_lists=10, list_size=10):
    B, S, E = seq.shape
    H, W = num_lists, list_size

    hid = seq @ w1 + b1                      # (B, S, U)
    hid = hid * jax.nn.sigmoid(hid)          # SiLU
    actions = jax.nn.softmax(hid @ w2 + b2, axis=-1)   # (B, S, 3)

    T = jnp.zeros((B, H, W), jnp.float32).at[:, 0, W - 1].set(1.0)
    rs = jnp.zeros((B, H), jnp.float32).at[:, 0].set(1.0)
    G = jnp.zeros((B, H, W, E), jnp.float32)

    for i in range(S):
        t = S - 1 - i
        a = actions[:, t]                    # (B, 3)
        tok = seq[:, t]                      # (B, E)
        a0, a1, a2 = a[:, 0:1], a[:, 1:2], a[:, 2:3]

        G = G + ((a0 + a1)[:, :, None] * T)[:, :, :, None] * tok[:, None, None, :]
        if i == S - 1:
            break

        # literal conv2d with kernel [0, a2, a0] along W, padding=1, groups=B
        T_pad = jnp.pad(T, ((0, 0), (0, 0), (1, 1)))
        full = a2[:, :, None] * T_pad[:, :, 1:W + 1] + a0[:, :, None] * T_pad[:, :, 2:W + 2]
        other_cols = full[:, :, : W - 1]

        sums = jnp.roll(rs, 1, axis=1).at[:, 0].set(0.0)
        sums = a1 * sums
        last_col = sums + a2 * T[:, :, -1]
        rs = (a0 + a2) * rs + sums
        T = jnp.concatenate([other_cols, last_col[:, :, None]], axis=2)
    return G


# ----------------------------------------------------------------------------
if __name__ == "__main__":
    B, S, E, U = 2, 8, 32, 32
    H, W = 10, 10

    key = jax.random.PRNGKey(0)
    k1, k2, k3, k4, k5 = jax.random.split(key, 5)
    seq = jax.random.normal(k1, (B, S, E), dtype=jnp.float32)
    # deterministic synthetic parameters (nn.Linear(E->U), nn.Linear(U->3))
    w1 = jax.random.normal(k2, (E, U), dtype=jnp.float32) / jnp.sqrt(E)
    b1 = jax.random.normal(k3, (U,), dtype=jnp.float32) * 0.1
    w2 = jax.random.normal(k4, (U, NUM_ACTIONS), dtype=jnp.float32) / jnp.sqrt(U)
    b2 = jax.random.normal(k5, (NUM_ACTIONS,), dtype=jnp.float32) * 0.1

    fn = jax.jit(functools.partial(seq2grid_pallas, num_lists=H, list_size=W))
    out = jax.block_until_ready(fn(seq, w1, b1, w2, b2))

    ref = seq2grid_ref(seq, w1, b1, w2, b2, num_lists=H, list_size=W)
    np.testing.assert_allclose(np.asarray(out), np.asarray(ref), rtol=1e-4, atol=1e-5)
    print("KERNEL_OK")
</pallas_src>

<mosaic_0001>
module attributes {stable_mosaic.version = 11 : i64} {
  func.func @_seq2grid_kernel(%arg0: i32, %arg1: memref<1x8x32xf32, #tpu.memory_space<vmem>>, %arg2: memref<1x100xf32, #tpu.memory_space<vmem>>, %arg3: memref<1x100xf32, #tpu.memory_space<vmem>>, %arg4: memref<32x32xf32, #tpu.memory_space<vmem>>, %arg5: memref<1x32xf32, #tpu.memory_space<vmem>>, %arg6: memref<32x3xf32, #tpu.memory_space<vmem>>, %arg7: memref<1x3xf32, #tpu.memory_space<vmem>>, %arg8: memref<1x100x32xf32, #tpu.memory_space<vmem>>, %arg9: memref<8x3xf32, #tpu.memory_space<vmem>>, %arg10: memref<8x100xf32, #tpu.memory_space<vmem>>) attributes {dimension_semantics = [#tpu.dimension_semantics<parallel>], iteration_bounds = array<i64: 2>, scalar_prefetch = 0 : i64, scratch_operands = 2 : i64, tpu.core_type = #tpu.core_type<tc>, window_params = [{transform_indices = @transform_0, window_bounds = array<i64: 1, 8, 32>}, {pipeline_mode = #tpu.pipeline_mode<synchronous>, transform_indices = @transform_1, window_bounds = array<i64: 1, 100>}, {pipeline_mode = #tpu.pipeline_mode<synchronous>, transform_indices = @transform_2, window_bounds = array<i64: 1, 100>}, {pipeline_mode = #tpu.pipeline_mode<synchronous>, transform_indices = @transform_3, window_bounds = array<i64: 32, 32>}, {pipeline_mode = #tpu.pipeline_mode<synchronous>, transform_indices = @transform_4, window_bounds = array<i64: 1, 32>}, {pipeline_mode = #tpu.pipeline_mode<synchronous>, transform_indices = @transform_5, window_bounds = array<i64: 32, 3>}, {pipeline_mode = #tpu.pipeline_mode<synchronous>, transform_indices = @transform_6, window_bounds = array<i64: 1, 3>}, {transform_indices = @transform_7, window_bounds = array<i64: 1, 100, 32>}]} {
    %c0 = arith.constant 0 : index
    %c0_0 = arith.constant 0 : index
    %c0_1 = arith.constant 0 : index
    %0 = vector.load %arg1[%c0, %c0_0, %c0_1] : memref<1x8x32xf32, #tpu.memory_space<vmem>>, vector<1x8x32xf32>
    %1 = vector.shape_cast %0 : vector<1x8x32xf32> to vector<8x32xf32>
    %c0_2 = arith.constant 0 : index
    %c0_3 = arith.constant 0 : index
    %2 = vector.load %arg4[%c0_2, %c0_3] : memref<32x32xf32, #tpu.memory_space<vmem>>, vector<32x32xf32>
    %cst = arith.constant dense<0.000000e+00> : vector<8x32xf32>
    %3 = tpu.matmul %1, %2, %cst {dimension_numbers = #tpu.dot_dimension_numbers<[1], [0], [0], [1], [0, 0, 1, 1], [], []>} : vector<8x32xf32>, vector<32x32xf32>, vector<8x32xf32> -> vector<8x32xf32>
    %c0_4 = arith.constant 0 : index
    %c0_5 = arith.constant 0 : index
    %4 = vector.load %arg5[%c0_4, %c0_5] : memref<1x32xf32, #tpu.memory_space<vmem>>, vector<1x32xf32>
    %5 = vector.broadcast %4 : vector<1x32xf32> to vector<8x32xf32>
    %6 = arith.addf %3, %5 : vector<8x32xf32>
    %7 = arith.negf %6 : vector<8x32xf32>
    %8 = math.exp %7 : vector<8x32xf32>
    %cst_6 = arith.constant 1.000000e+00 : f32
    %9 = vector.broadcast %cst_6 : f32 to vector<8x32xf32>
    %10 = arith.addf %9, %8 : vector<8x32xf32>
    %11 = arith.divf %9, %10 : vector<8x32xf32>
    %12 = arith.mulf %6, %11 : vector<8x32xf32>
    %c0_7 = arith.constant 0 : index
    %c0_8 = arith.constant 0 : index
    %13 = vector.load %arg6[%c0_7, %c0_8] : memref<32x3xf32, #tpu.memory_space<vmem>>, vector<32x3xf32>
    %cst_9 = arith.constant dense<0.000000e+00> : vector<8x3xf32>
    %14 = tpu.matmul %12, %13, %cst_9 {dimension_numbers = #tpu.dot_dimension_numbers<[1], [0], [0], [1], [0, 0, 1, 1], [], []>} : vector<8x32xf32>, vector<32x3xf32>, vector<8x3xf32> -> vector<8x3xf32>
    %c0_10 = arith.constant 0 : index
    %c0_11 = arith.constant 0 : index
    %15 = vector.load %arg7[%c0_10, %c0_11] : memref<1x3xf32, #tpu.memory_space<vmem>>, vector<1x3xf32>
    %16 = vector.broadcast %15 : vector<1x3xf32> to vector<8x3xf32>
    %17 = arith.addf %14, %16 : vector<8x3xf32>
    %cst_12 = arith.constant dense<0xFF800000> : vector<8xf32>
    %18 = vector.multi_reduction <maximumf>, %17, %cst_12 [1] : vector<8x3xf32> to vector<8xf32>
    %19 = vector.shape_cast %18 : vector<8xf32> to vector<8x1xf32>
    %20 = vector.broadcast %19 : vector<8x1xf32> to vector<8x3xf32>
    %21 = arith.subf %17, %20 : vector<8x3xf32>
    %22 = math.exp %21 : vector<8x3xf32>
    %cst_13 = arith.constant dense<0.000000e+00> : vector<8xf32>
    %23 = vector.multi_reduction <add>, %22, %cst_13 [1] : vector<8x3xf32> to vector<8xf32>
    %24 = vector.shape_cast %23 : vector<8xf32> to vector<8x1xf32>
    %25 = vector.broadcast %24 : vector<8x1xf32> to vector<8x3xf32>
    %26 = arith.divf %22, %25 : vector<8x3xf32>
    %c0_14 = arith.constant 0 : index
    %c0_15 = arith.constant 0 : index
    %27 = vector.load %arg9[%c0_14, %c0_15] : memref<8x3xf32, #tpu.memory_space<vmem>>, vector<8x3xf32>
    tpu.vector_store %arg9[%c0_14, %c0_15], %26 {strides = array<i32>} : memref<8x3xf32, #tpu.memory_space<vmem>>, vector<8x3xf32>,
    %c0_16 = arith.constant 0 : index
    %c0_17 = arith.constant 0 : index
    %28 = vector.load %arg2[%c0_16, %c0_17] : memref<1x100xf32, #tpu.memory_space<vmem>>, vector<1x100xf32>
    %c0_18 = arith.constant 0 : index
    %c0_19 = arith.constant 0 : index
    %29 = vector.load %arg3[%c0_18, %c0_19] : memref<1x100xf32, #tpu.memory_space<vmem>>, vector<1x100xf32>
    %cst_20 = arith.constant 1.000000e+00 : f32
    %30 = vector.broadcast %cst_20 : f32 to vector<1x100xf32>
    %31 = arith.subf %30, %28 : vector<1x100xf32>
    %cst_21 = arith.constant 1.000000e+00 : f32
    %32 = vector.broadcast %cst_21 : f32 to vector<1x100xf32>
    %33 = arith.subf %32, %29 : vector<1x100xf32>
    %34 = arith.mulf %28, %29 : vector<1x100xf32>
    %c0_i32 = arith.constant 0 : i32
    %c7_i32 = arith.constant 7 : i32
    %35 = arith.subi %c7_i32, %c0_i32 : i32
    %36 = arith.index_cast %35 : i32 to index
    %c0_22 = arith.constant 0 : index
    %37 = vector.load %arg9[%36, %c0_22] : memref<8x3xf32, #tpu.memory_space<vmem>>, vector<1x3xf32>
    %38 = vector.extract_strided_slice %37 {offsets = [0, 0], sizes = [1, 1], strides = [1, 1]} : vector<1x3xf32> to vector<1x1xf32>
    %39 = vector.extract_strided_slice %37 {offsets = [0, 1], sizes = [1, 1], strides = [1, 1]} : vector<1x3xf32> to vector<1x1xf32>
    %40 = vector.extract_strided_slice %37 {offsets = [0, 2], sizes = [1, 1], strides = [1, 1]} : vector<1x3xf32> to vector<1x1xf32>
    %41 = arith.addf %38, %39 : vector<1x1xf32>
    %42 = vector.broadcast %41 : vector<1x1xf32> to vector<1x100xf32>
    %43 = arith.mulf %42, %34 : vector<1x100xf32>
    %44 = arith.index_cast %35 : i32 to index
    %c0_23 = arith.constant 0 : index
    %45 = vector.load %arg10[%44, %c0_23] : memref<8x100xf32, #tpu.memory_space<vmem>>, vector<1x100xf32>
    tpu.vector_store %arg10[%44, %c0_23], %43 {strides = array<i32>} : memref<8x100xf32, #tpu.memory_space<vmem>>, vector<1x100xf32>,
    %46 = vector.extract_strided_slice %34 {offsets = [0, 1], sizes = [1, 99], strides = [1, 1]} : vector<1x100xf32> to vector<1x99xf32>
    %47 = vector.extract_strided_slice %34 {offsets = [0, 0], sizes = [1, 1], strides = [1, 1]} : vector<1x100xf32> to vector<1x1xf32>
    %48 = tpu.concatenate %46, %47 in 1 : vector<1x99xf32>, vector<1x1xf32> -> vector<1x100xf32>
    %49 = arith.mulf %48, %31 : vector<1x100xf32>
    %50 = vector.extract_strided_slice %34 {offsets = [0, 90], sizes = [1, 10], strides = [1, 1]} : vector<1x100xf32> to vector<1x10xf32>
    %51 = vector.extract_strided_slice %34 {offsets = [0, 0], sizes = [1, 90], strides = [1, 1]} : vector<1x100xf32> to vector<1x90xf32>
    %52 = tpu.concatenate %50, %51 in 1 : vector<1x10xf32>, vector<1x90xf32> -> vector<1x100xf32>
    %53 = arith.mulf %52, %33 : vector<1x100xf32>
    %54 = vector.broadcast %39 : vector<1x1xf32> to vector<1x100xf32>
    %55 = arith.mulf %54, %53 : vector<1x100xf32>
    %56 = vector.broadcast %40 : vector<1x1xf32> to vector<1x100xf32>
    %57 = arith.mulf %56, %34 : vector<1x100xf32>
    %58 = vector.broadcast %38 : vector<1x1xf32> to vector<1x100xf32>
    %59 = arith.mulf %58, %49 : vector<1x100xf32>
    %60 = arith.addf %57, %59 : vector<1x100xf32>
    %61 = arith.addf %60, %55 : vector<1x100xf32>
    %62 = arith.addf %38, %40 : vector<1x1xf32>
    %63 = vector.broadcast %62 : vector<1x1xf32> to vector<1x100xf32>
    %64 = arith.mulf %63, %34 : vector<1x100xf32>
    %65 = arith.addf %64, %55 : vector<1x100xf32>
    %c1_i32 = arith.constant 1 : i32
    %c7_i32_24 = arith.constant 7 : i32
    %66 = arith.subi %c7_i32_24, %c1_i32 : i32
    %67 = arith.index_cast %66 : i32 to index
    %c0_25 = arith.constant 0 : index
    %68 = vector.load %arg9[%67, %c0_25] : memref<8x3xf32, #tpu.memory_space<vmem>>, vector<1x3xf32>
    %69 = vector.extract_strided_slice %68 {offsets = [0, 0], sizes = [1, 1], strides = [1, 1]} : vector<1x3xf32> to vector<1x1xf32>
    %70 = vector.extract_strided_slice %68 {offsets = [0, 1], sizes = [1, 1], strides = [1, 1]} : vector<1x3xf32> to vector<1x1xf32>
    %71 = vector.extract_strided_slice %68 {offsets = [0, 2], sizes = [1, 1], strides = [1, 1]} : vector<1x3xf32> to vector<1x1xf32>
    %72 = arith.addf %69, %70 : vector<1x1xf32>
    %73 = vector.broadcast %72 : vector<1x1xf32> to vector<1x100xf32>
    %74 = arith.mulf %73, %61 : vector<1x100xf32>
    %75 = arith.index_cast %66 : i32 to index
    %c0_26 = arith.constant 0 : index
    %76 = vector.load %arg10[%75, %c0_26] : memref<8x100xf32, #tpu.memory_space<vmem>>, vector<1x100xf32>
    tpu.vector_store %arg10[%75, %c0_26], %74 {strides = array<i32>} : memref<8x100xf32, #tpu.memory_space<vmem>>, vector<1x100xf32>,
    %77 = vector.extract_strided_slice %61 {offsets = [0, 1], sizes = [1, 99], strides = [1, 1]} : vector<1x100xf32> to vector<1x99xf32>
    %78 = vector.extract_strided_slice %61 {offsets = [0, 0], sizes = [1, 1], strides = [1, 1]} : vector<1x100xf32> to vector<1x1xf32>
    %79 = tpu.concatenate %77, %78 in 1 : vector<1x99xf32>, vector<1x1xf32> -> vector<1x100xf32>
    %80 = arith.mulf %79, %31 : vector<1x100xf32>
    %81 = vector.extract_strided_slice %65 {offsets = [0, 90], sizes = [1, 10], strides = [1, 1]} : vector<1x100xf32> to vector<1x10xf32>
    %82 = vector.extract_strided_slice %65 {offsets = [0, 0], sizes = [1, 90], strides = [1, 1]} : vector<1x100xf32> to vector<1x90xf32>
    %83 = tpu.concatenate %81, %82 in 1 : vector<1x10xf32>, vector<1x90xf32> -> vector<1x100xf32>
    %84 = arith.mulf %83, %33 : vector<1x100xf32>
    %85 = vector.broadcast %70 : vector<1x1xf32> to vector<1x100xf32>
    %86 = arith.mulf %85, %84 : vector<1x100xf32>
    %87 = vector.broadcast %71 : vector<1x1xf32> to vector<1x100xf32>
    %88 = arith.mulf %87, %61 : vector<1x100xf32>
    %89 = vector.broadcast %69 : vector<1x1xf32> to vector<1x100xf32>
    %90 = arith.mulf %89, %80 : vector<1x100xf32>
    %91 = arith.addf %88, %90 : vector<1x100xf32>
    %92 = arith.addf %91, %86 : vector<1x100xf32>
    %93 = arith.addf %69, %71 : vector<1x1xf32>
    %94 = vector.broadcast %93 : vector<1x1xf32> to vector<1x100xf32>
    %95 = arith.mulf %94, %65 : vector<1x100xf32>
    %96 = arith.addf %95, %86 : vector<1x100xf32>
    %c2_i32 = arith.constant 2 : i32
    %c7_i32_27 = arith.constant 7 : i32
    %97 = arith.subi %c7_i32_27, %c2_i32 : i32
    %98 = arith.index_cast %97 : i32 to index
    %c0_28 = arith.constant 0 : index
    %99 = vector.load %arg9[%98, %c0_28] : memref<8x3xf32, #tpu.memory_space<vmem>>, vector<1x3xf32>
    %100 = vector.extract_strided_slice %99 {offsets = [0, 0], sizes = [1, 1], strides = [1, 1]} : vector<1x3xf32> to vector<1x1xf32>
    %101 = vector.extract_strided_slice %99 {offsets = [0, 1], sizes = [1, 1], strides = [1, 1]} : vector<1x3xf32> to vector<1x1xf32>
    %102 = vector.extract_strided_slice %99 {offsets = [0, 2], sizes = [1, 1], strides = [1, 1]} : vector<1x3xf32> to vector<1x1xf32>
    %103 = arith.addf %100, %101 : vector<1x1xf32>
    %104 = vector.broadcast %103 : vector<1x1xf32> to vector<1x100xf32>
    %105 = arith.mulf %104, %92 : vector<1x100xf32>
    %106 = arith.index_cast %97 : i32 to index
    %c0_29 = arith.constant 0 : index
    %107 = vector.load %arg10[%106, %c0_29] : memref<8x100xf32, #tpu.memory_space<vmem>>, vector<1x100xf32>
    tpu.vector_store %arg10[%106, %c0_29], %105 {strides = array<i32>} : memref<8x100xf32, #tpu.memory_space<vmem>>, vector<1x100xf32>,
    %108 = vector.extract_strided_slice %92 {offsets = [0, 1], sizes = [1, 99], strides = [1, 1]} : vector<1x100xf32> to vector<1x99xf32>
    %109 = vector.extract_strided_slice %92 {offsets = [0, 0], sizes = [1, 1], strides = [1, 1]} : vector<1x100xf32> to vector<1x1xf32>
    %110 = tpu.concatenate %108, %109 in 1 : vector<1x99xf32>, vector<1x1xf32> -> vector<1x100xf32>
    %111 = arith.mulf %110, %31 : vector<1x100xf32>
    %112 = vector.extract_strided_slice %96 {offsets = [0, 90], sizes = [1, 10], strides = [1, 1]} : vector<1x100xf32> to vector<1x10xf32>
    %113 = vector.extract_strided_slice %96 {offsets = [0, 0], sizes = [1, 90], strides = [1, 1]} : vector<1x100xf32> to vector<1x90xf32>
    %114 = tpu.concatenate %112, %113 in 1 : vector<1x10xf32>, vector<1x90xf32> -> vector<1x100xf32>
    %115 = arith.mulf %114, %33 : vector<1x100xf32>
    %116 = vector.broadcast %101 : vector<1x1xf32> to vector<1x100xf32>
    %117 = arith.mulf %116, %115 : vector<1x100xf32>
    %118 = vector.broadcast %102 : vector<1x1xf32> to vector<1x100xf32>
    %119 = arith.mulf %118, %92 : vector<1x100xf32>
    %120 = vector.broadcast %100 : vector<1x1xf32> to vector<1x100xf32>
    %121 = arith.mulf %120, %111 : vector<1x100xf32>
    %122 = arith.addf %119, %121 : vector<1x100xf32>
    %123 = arith.addf %122, %117 : vector<1x100xf32>
    %124 = arith.addf %100, %102 : vector<1x1xf32>
    %125 = vector.broadcast %124 : vector<1x1xf32> to vector<1x100xf32>
    %126 = arith.mulf %125, %96 : vector<1x100xf32>
    %127 = arith.addf %126, %117 : vector<1x100xf32>
    %c3_i32 = arith.constant 3 : i32
    %c7_i32_30 = arith.constant 7 : i32
    %128 = arith.subi %c7_i32_30, %c3_i32 : i32
    %129 = arith.index_cast %128 : i32 to index
    %c0_31 = arith.constant 0 : index
    %130 = vector.load %arg9[%129, %c0_31] : memref<8x3xf32, #tpu.memory_space<vmem>>, vector<1x3xf32>
    %131 = vector.extract_strided_slice %130 {offsets = [0, 0], sizes = [1, 1], strides = [1, 1]} : vector<1x3xf32> to vector<1x1xf32>
    %132 = vector.extract_strided_slice %130 {offsets = [0, 1], sizes = [1, 1], strides = [1, 1]} : vector<1x3xf32> to vector<1x1xf32>
    %133 = vector.extract_strided_slice %130 {offsets = [0, 2], sizes = [1, 1], strides = [1, 1]} : vector<1x3xf32> to vector<1x1xf32>
    %134 = arith.addf %131, %132 : vector<1x1xf32>
    %135 = vector.broadcast %134 : vector<1x1xf32> to vector<1x100xf32>
    %136 = arith.mulf %135, %123 : vector<1x100xf32>
    %137 = arith.index_cast %128 : i32 to index
    %c0_32 = arith.constant 0 : index
    %138 = vector.load %arg10[%137, %c0_32] : memref<8x100xf32, #tpu.memory_space<vmem>>, vector<1x100xf32>
    tpu.vector_store %arg10[%137, %c0_32], %136 {strides = array<i32>} : memref<8x100xf32, #tpu.memory_space<vmem>>, vector<1x100xf32>,
    %139 = vector.extract_strided_slice %123 {offsets = [0, 1], sizes = [1, 99], strides = [1, 1]} : vector<1x100xf32> to vector<1x99xf32>
    %140 = vector.extract_strided_slice %123 {offsets = [0, 0], sizes = [1, 1], strides = [1, 1]} : vector<1x100xf32> to vector<1x1xf32>
    %141 = tpu.concatenate %139, %140 in 1 : vector<1x99xf32>, vector<1x1xf32> -> vector<1x100xf32>
    %142 = arith.mulf %141, %31 : vector<1x100xf32>
    %143 = vector.extract_strided_slice %127 {offsets = [0, 90], sizes = [1, 10], strides = [1, 1]} : vector<1x100xf32> to vector<1x10xf32>
    %144 = vector.extract_strided_slice %127 {offsets = [0, 0], sizes = [1, 90], strides = [1, 1]} : vector<1x100xf32> to vector<1x90xf32>
    %145 = tpu.concatenate %143, %144 in 1 : vector<1x10xf32>, vector<1x90xf32> -> vector<1x100xf32>
    %146 = arith.mulf %145, %33 : vector<1x100xf32>
    %147 = vector.broadcast %132 : vector<1x1xf32> to vector<1x100xf32>
    %148 = arith.mulf %147, %146 : vector<1x100xf32>
    %149 = vector.broadcast %133 : vector<1x1xf32> to vector<1x100xf32>
    %150 = arith.mulf %149, %123 : vector<1x100xf32>
    %151 = vector.broadcast %131 : vector<1x1xf32> to vector<1x100xf32>
    %152 = arith.mulf %151, %142 : vector<1x100xf32>
    %153 = arith.addf %150, %152 : vector<1x100xf32>
    %154 = arith.addf %153, %148 : vector<1x100xf32>
    %155 = arith.addf %131, %133 : vector<1x1xf32>
    %156 = vector.broadcast %155 : vector<1x1xf32> to vector<1x100xf32>
    %157 = arith.mulf %156, %127 : vector<1x100xf32>
    %158 = arith.addf %157, %148 : vector<1x100xf32>
    %c4_i32 = arith.constant 4 : i32
    %c7_i32_33 = arith.constant 7 : i32
    %159 = arith.subi %c7_i32_33, %c4_i32 : i32
    %160 = arith.index_cast %159 : i32 to index
    %c0_34 = arith.constant 0 : index
    %161 = vector.load %arg9[%160, %c0_34] : memref<8x3xf32, #tpu.memory_space<vmem>>, vector<1x3xf32>
    %162 = vector.extract_strided_slice %161 {offsets = [0, 0], sizes = [1, 1], strides = [1, 1]} : vector<1x3xf32> to vector<1x1xf32>
    %163 = vector.extract_strided_slice %161 {offsets = [0, 1], sizes = [1, 1], strides = [1, 1]} : vector<1x3xf32> to vector<1x1xf32>
    %164 = vector.extract_strided_slice %161 {offsets = [0, 2], sizes = [1, 1], strides = [1, 1]} : vector<1x3xf32> to vector<1x1xf32>
    %165 = arith.addf %162, %163 : vector<1x1xf32>
    %166 = vector.broadcast %165 : vector<1x1xf32> to vector<1x100xf32>
    %167 = arith.mulf %166, %154 : vector<1x100xf32>
    %168 = arith.index_cast %159 : i32 to index
    %c0_35 = arith.constant 0 : index
    %169 = vector.load %arg10[%168, %c0_35] : memref<8x100xf32, #tpu.memory_space<vmem>>, vector<1x100xf32>
    tpu.vector_store %arg10[%168, %c0_35], %167 {strides = array<i32>} : memref<8x100xf32, #tpu.memory_space<vmem>>, vector<1x100xf32>,
    %170 = vector.extract_strided_slice %154 {offsets = [0, 1], sizes = [1, 99], strides = [1, 1]} : vector<1x100xf32> to vector<1x99xf32>
    %171 = vector.extract_strided_slice %154 {offsets = [0, 0], sizes = [1, 1], strides = [1, 1]} : vector<1x100xf32> to vector<1x1xf32>
    %172 = tpu.concatenate %170, %171 in 1 : vector<1x99xf32>, vector<1x1xf32> -> vector<1x100xf32>
    %173 = arith.mulf %172, %31 : vector<1x100xf32>
    %174 = vector.extract_strided_slice %158 {offsets = [0, 90], sizes = [1, 10], strides = [1, 1]} : vector<1x100xf32> to vector<1x10xf32>
    %175 = vector.extract_strided_slice %158 {offsets = [0, 0], sizes = [1, 90], strides = [1, 1]} : vector<1x100xf32> to vector<1x90xf32>
    %176 = tpu.concatenate %174, %175 in 1 : vector<1x10xf32>, vector<1x90xf32> -> vector<1x100xf32>
    %177 = arith.mulf %176, %33 : vector<1x100xf32>
    %178 = vector.broadcast %163 : vector<1x1xf32> to vector<1x100xf32>
    %179 = arith.mulf %178, %177 : vector<1x100xf32>
    %180 = vector.broadcast %164 : vector<1x1xf32> to vector<1x100xf32>
    %181 = arith.mulf %180, %154 : vector<1x100xf32>
    %182 = vector.broadcast %162 : vector<1x1xf32> to vector<1x100xf32>
    %183 = arith.mulf %182, %173 : vector<1x100xf32>
    %184 = arith.addf %181, %183 : vector<1x100xf32>
    %185 = arith.addf %184, %179 : vector<1x100xf32>
    %186 = arith.addf %162, %164 : vector<1x1xf32>
    %187 = vector.broadcast %186 : vector<1x1xf32> to vector<1x100xf32>
    %188 = arith.mulf %187, %158 : vector<1x100xf32>
    %189 = arith.addf %188, %179 : vector<1x100xf32>
    %c5_i32 = arith.constant 5 : i32
    %c7_i32_36 = arith.constant 7 : i32
    %190 = arith.subi %c7_i32_36, %c5_i32 : i32
    %191 = arith.index_cast %190 : i32 to index
    %c0_37 = arith.constant 0 : index
    %192 = vector.load %arg9[%191, %c0_37] : memref<8x3xf32, #tpu.memory_space<vmem>>, vector<1x3xf32>
    %193 = vector.extract_strided_slice %192 {offsets = [0, 0], sizes = [1, 1], strides = [1, 1]} : vector<1x3xf32> to vector<1x1xf32>
    %194 = vector.extract_strided_slice %192 {offsets = [0, 1], sizes = [1, 1], strides = [1, 1]} : vector<1x3xf32> to vector<1x1xf32>
    %195 = vector.extract_strided_slice %192 {offsets = [0, 2], sizes = [1, 1], strides = [1, 1]} : vector<1x3xf32> to vector<1x1xf32>
    %196 = arith.addf %193, %194 : vector<1x1xf32>
    %197 = vector.broadcast %196 : vector<1x1xf32> to vector<1x100xf32>
    %198 = arith.mulf %197, %185 : vector<1x100xf32>
    %199 = arith.index_cast %190 : i32 to index
    %c0_38 = arith.constant 0 : index
    %200 = vector.load %arg10[%199, %c0_38] : memref<8x100xf32, #tpu.memory_space<vmem>>, vector<1x100xf32>
    tpu.vector_store %arg10[%199, %c0_38], %198 {strides = array<i32>} : memref<8x100xf32, #tpu.memory_space<vmem>>, vector<1x100xf32>,
    %201 = vector.extract_strided_slice %185 {offsets = [0, 1], sizes = [1, 99], strides = [1, 1]} : vector<1x100xf32> to vector<1x99xf32>
    %202 = vector.extract_strided_slice %185 {offsets = [0, 0], sizes = [1, 1], strides = [1, 1]} : vector<1x100xf32> to vector<1x1xf32>
    %203 = tpu.concatenate %201, %202 in 1 : vector<1x99xf32>, vector<1x1xf32> -> vector<1x100xf32>
    %204 = arith.mulf %203, %31 : vector<1x100xf32>
    %205 = vector.extract_strided_slice %189 {offsets = [0, 90], sizes = [1, 10], strides = [1, 1]} : vector<1x100xf32> to vector<1x10xf32>
    %206 = vector.extract_strided_slice %189 {offsets = [0, 0], sizes = [1, 90], strides = [1, 1]} : vector<1x100xf32> to vector<1x90xf32>
    %207 = tpu.concatenate %205, %206 in 1 : vector<1x10xf32>, vector<1x90xf32> -> vector<1x100xf32>
    %208 = arith.mulf %207, %33 : vector<1x100xf32>
    %209 = vector.broadcast %194 : vector<1x1xf32> to vector<1x100xf32>
    %210 = arith.mulf %209, %208 : vector<1x100xf32>
    %211 = vector.broadcast %195 : vector<1x1xf32> to vector<1x100xf32>
    %212 = arith.mulf %211, %185 : vector<1x100xf32>
    %213 = vector.broadcast %193 : vector<1x1xf32> to vector<1x100xf32>
    %214 = arith.mulf %213, %204 : vector<1x100xf32>
    %215 = arith.addf %212, %214 : vector<1x100xf32>
    %216 = arith.addf %215, %210 : vector<1x100xf32>
    %217 = arith.addf %193, %195 : vector<1x1xf32>
    %218 = vector.broadcast %217 : vector<1x1xf32> to vector<1x100xf32>
    %219 = arith.mulf %218, %189 : vector<1x100xf32>
    %220 = arith.addf %219, %210 : vector<1x100xf32>
    %c6_i32 = arith.constant 6 : i32
    %c7_i32_39 = arith.constant 7 : i32
    %221 = arith.subi %c7_i32_39, %c6_i32 : i32
    %222 = arith.index_cast %221 : i32 to index
    %c0_40 = arith.constant 0 : index
    %223 = vector.load %arg9[%222, %c0_40] : memref<8x3xf32, #tpu.memory_space<vmem>>, vector<1x3xf32>
    %224 = vector.extract_strided_slice %223 {offsets = [0, 0], sizes = [1, 1], strides = [1, 1]} : vector<1x3xf32> to vector<1x1xf32>
    %225 = vector.extract_strided_slice %223 {offsets = [0, 1], sizes = [1, 1], strides = [1, 1]} : vector<1x3xf32> to vector<1x1xf32>
    %226 = vector.extract_strided_slice %223 {offsets = [0, 2], sizes = [1, 1], strides = [1, 1]} : vector<1x3xf32> to vector<1x1xf32>
    %227 = arith.addf %224, %225 : vector<1x1xf32>
    %228 = vector.broadcast %227 : vector<1x1xf32> to vector<1x100xf32>
    %229 = arith.mulf %228, %216 : vector<1x100xf32>
    %230 = arith.index_cast %221 : i32 to index
    %c0_41 = arith.constant 0 : index
    %231 = vector.load %arg10[%230, %c0_41] : memref<8x100xf32, #tpu.memory_space<vmem>>, vector<1x100xf32>
    tpu.vector_store %arg10[%230, %c0_41], %229 {strides = array<i32>} : memref<8x100xf32, #tpu.memory_space<vmem>>, vector<1x100xf32>,
    %232 = vector.extract_strided_slice %216 {offsets = [0, 1], sizes = [1, 99], strides = [1, 1]} : vector<1x100xf32> to vector<1x99xf32>
    %233 = vector.extract_strided_slice %216 {offsets = [0, 0], sizes = [1, 1], strides = [1, 1]} : vector<1x100xf32> to vector<1x1xf32>
    %234 = tpu.concatenate %232, %233 in 1 : vector<1x99xf32>, vector<1x1xf32> -> vector<1x100xf32>
    %235 = arith.mulf %234, %31 : vector<1x100xf32>
    %236 = vector.extract_strided_slice %220 {offsets = [0, 90], sizes = [1, 10], strides = [1, 1]} : vector<1x100xf32> to vector<1x10xf32>
    %237 = vector.extract_strided_slice %220 {offsets = [0, 0], sizes = [1, 90], strides = [1, 1]} : vector<1x100xf32> to vector<1x90xf32>
    %238 = tpu.concatenate %236, %237 in 1 : vector<1x10xf32>, vector<1x90xf32> -> vector<1x100xf32>
    %239 = arith.mulf %238, %33 : vector<1x100xf32>
    %240 = vector.broadcast %225 : vector<1x1xf32> to vector<1x100xf32>
    %241 = arith.mulf %240, %239 : vector<1x100xf32>
    %242 = vector.broadcast %226 : vector<1x1xf32> to vector<1x100xf32>
    %243 = arith.mulf %242, %216 : vector<1x100xf32>
    %244 = vector.broadcast %224 : vector<1x1xf32> to vector<1x100xf32>
    %245 = arith.mulf %244, %235 : vector<1x100xf32>
    %246 = arith.addf %243, %245 : vector<1x100xf32>
    %247 = arith.addf %246, %241 : vector<1x100xf32>
    %248 = arith.addf %224, %226 : vector<1x1xf32>
    %249 = vector.broadcast %248 : vector<1x1xf32> to vector<1x100xf32>
    %250 = arith.mulf %249, %220 : vector<1x100xf32>
    %251 = arith.addf %250, %241 : vector<1x100xf32>
    %c7_i32_42 = arith.constant 7 : i32
    %c0_43 = arith.constant 0 : index
    %c0_44 = arith.constant 0 : index
    %252 = vector.load %arg9[%c0_43, %c0_44] : memref<8x3xf32, #tpu.memory_space<vmem>>, vector<1x3xf32>
    %253 = vector.extract_strided_slice %252 {offsets = [0, 0], sizes = [1, 1], strides = [1, 1]} : vector<1x3xf32> to vector<1x1xf32>
    %254 = vector.extract_strided_slice %252 {offsets = [0, 1], sizes = [1, 1], strides = [1, 1]} : vector<1x3xf32> to vector<1x1xf32>
    %255 = arith.addf %253, %254 : vector<1x1xf32>
    %256 = vector.broadcast %255 : vector<1x1xf32> to vector<1x100xf32>
    %257 = arith.mulf %256, %247 : vector<1x100xf32>
    %c0_45 = arith.constant 0 : index
    %c0_46 = arith.constant 0 : index
    %258 = vector.load %arg10[%c0_45, %c0_46] : memref<8x100xf32, #tpu.memory_space<vmem>>, vector<1x100xf32>
    tpu.vector_store %arg10[%c0_45, %c0_46], %257 {strides = array<i32>} : memref<8x100xf32, #tpu.memory_space<vmem>>, vector<1x100xf32>,
    %c0_47 = arith.constant 0 : index
    %c0_48 = arith.constant 0 : index
    %259 = vector.load %arg10[%c0_47, %c0_48] : memref<8x100xf32, #tpu.memory_space<vmem>>, vector<8x100xf32>
    %cst_49 = arith.constant dense<0.000000e+00> : vector<100x32xf32>
    %260 = tpu.matmul %259, %1, %cst_49 {dimension_numbers = #tpu.dot_dimension_numbers<[0], [0], [1], [1], [0, 1, 1, 1], [], []>} : vector<8x100xf32>, vector<8x32xf32>, vector<100x32xf32> -> vector<100x32xf32>
    %261 = vector.shape_cast %260 : vector<100x32xf32> to vector<1x100x32xf32>
    %c0_50 = arith.constant 0 : index
    %c0_51 = arith.constant 0 : index
    %c0_52 = arith.constant 0 : index
    %262 = vector.load %arg8[%c0_50, %c0_51, %c0_52] : memref<1x100x32xf32, #tpu.memory_space<vmem>>, vector<1x100x32xf32>
    tpu.vector_store %arg8[%c0_50, %c0_51, %c0_52], %261 {strides = array<i32>} : memref<1x100x32xf32, #tpu.memory_space<vmem>>, vector<1x100x32xf32>,
    return
  }
  func.func @transform_0(%arg0: i32) -> (i32, i32, i32) {
    %c0_i32 = arith.constant 0 : i32
    %c0_i32_0 = arith.constant 0 : i32
    %c0_i32_1 = arith.constant 0 : i32
    return %arg0, %c0_i32, %c0_i32_0 : i32, i32, i32
  }
  func.func @transform_1(%arg0: i32) -> (i32, i32) {
    %c0_i32 = arith.constant 0 : i32
    %c0_i32_0 = arith.constant 0 : i32
    %c0_i32_1 = arith.constant 0 : i32
    return %c0_i32, %c0_i32_0 : i32, i32
  }
  func.func @transform_2(%arg0: i32) -> (i32, i32) {
    %c0_i32 = arith.constant 0 : i32
    %c0_i32_0 = arith.constant 0 : i32
    %c0_i32_1 = arith.constant 0 : i32
    return %c0_i32, %c0_i32_0 : i32, i32
  }
  func.func @transform_3(%arg0: i32) -> (i32, i32) {
    %c0_i32 = arith.constant 0 : i32
    %c0_i32_0 = arith.constant 0 : i32
    %c0_i32_1 = arith.constant 0 : i32
    return %c0_i32, %c0_i32_0 : i32, i32
  }
  func.func @transform_4(%arg0: i32) -> (i32, i32) {
    %c0_i32 = arith.constant 0 : i32
    %c0_i32_0 = arith.constant 0 : i32
    %c0_i32_1 = arith.constant 0 : i32
    return %c0_i32, %c0_i32_0 : i32, i32
  }
  func.func @transform_5(%arg0: i32) -> (i32, i32) {
    %c0_i32 = arith.constant 0 : i32
    %c0_i32_0 = arith.constant 0 : i32
    %c0_i32_1 = arith.constant 0 : i32
    return %c0_i32, %c0_i32_0 : i32, i32
  }
  func.func @transform_6(%arg0: i32) -> (i32, i32) {
    %c0_i32 = arith.constant 0 : i32
    %c0_i32_0 = arith.constant 0 : i32
    %c0_i32_1 = arith.constant 0 : i32
    return %c0_i32, %c0_i32_0 : i32, i32
  }
  func.func @transform_7(%arg0: i32) -> (i32, i32, i32) {
    %c0_i32 = arith.constant 0 : i32
    %c0_i32_0 = arith.constant 0 : i32
    %c0_i32_1 = arith.constant 0 : i32
    return %arg0, %c0_i32, %c0_i32_0 : i32, i32, i32
  }
}

</mosaic_0001>

<bundles_post_ra>
// kernel: seq2grid_pallas.1
= control target key start
LH: loop header
LB: loop body
LE: loop exit
PB: predicated region body
PF: predicated region fallthrough
CT: control target
= control target key end

     0   :  { %12 = vsyncpa [#allocation5], 0  ;;  %s1940_s0 = inlined_call_operand.hbm [shape: f32[2,8,32], index: 0, kind: input, shape index: {}]   ;;  %s1941_s1 = inlined_call_operand.vmem [shape: f32[1,100], index: 1, kind: input, shape index: {}]   ;;  %s1942_s2 = inlined_call_operand.vmem [shape: f32[1,100], index: 2, kind: input, shape index: {}]   ;;  %s1943_s3 = inlined_call_operand.vmem [shape: f32[32,32], index: 3, kind: input, shape index: {}]   ;;  %s1944_s4 = inlined_call_operand.vmem [shape: f32[1,32], index: 4, kind: input, shape index: {}]   ;;  %s1945_s5 = inlined_call_operand.vmem [shape: f32[32,3], index: 5, kind: input, shape index: {}]   ;;  %s1946_s6 = inlined_call_operand.vmem [shape: f32[1,3], index: 6, kind: input, shape index: {}]   ;;  %s1947_s7 = inlined_call_operand.vmem [shape: f32[2,100,32], index: 7, kind: output, shape index: {}]  }
   0x1   :  { %14 = vsyncpa [#allocation5 + $0x1], 0  ;;  %s1525_s24 = smov 0   ;;  %s1527_s25 = smov 0  }
   0x2   :  { %s1529_s26 = smov 0   ;;  %s1531_s27 = smov 0  }
   0x3 LB: > { %s1544_s28 = sadd.s32 4294967295, %s1471_s27   ;;  %s1547_s29 = sadd.s32 1, %s1471_s27   ;;  %s1471_s27 = sphi %s1531_s27, %s1955_s27   ;;  %s1467_s26 = sphi %s1529_s26, %s1954_s26   ;;  %s1463_s25 = sphi %s1527_s25, %s1953_s25   ;;  %s1459_s24 = sphi %s1525_s24, %s1952_s24  }
   0x4   : > { %s24_s30 = ssub.s32 %s1471_s27, %s1547_s29  ;;  %s27_s8 = sadd.s32 1, %s1467_s26 }
   0x5   : > { %p25_p0 = scmp.eq.s32.totalorder %s24_s30, 0  ;;  %p34_p1 = scmp.ne.s32.totalorder %s1467_s26, %s1463_s25 }
   0x6   : > { %p35_p2 = scmp.eq.s32.totalorder %s1471_s27, 0  ;;  %p40_p3 = scmp.ne.s32.totalorder %s1463_s25, %s1459_s24 }
   0x7   : > { %s1557_s9 = scalar_select %p25_p0, %s1467_s26, %s27_s8  }
   0x8   : > { %p36_p4 = por %p35_p2, %p34_p1  ;;  %p41_p5 = scmp.eq.s32.totalorder %s1544_s28, 0 }
   0x9   : > { %p1332_p6 = scmp.lt.s32.totalorder %s1471_s27, 2  ;;  %s234_s11 = sand.u32 1, %s1467_s26  }
   0xa   : > { %p1561_p7 = por %p41_p5, %p40_p3  ;;  %s1199_s12 = sshll.u32 %s234_s11, 3 }
   0xb   : > { %s1200_s13 = sshll.u32 %s1471_s27, 7  ;;  %s238_s17 = scalar_lea.vmem [#allocation4], %s1199_s12 }
   0xc   : > { %s1570_s16 = scalar_lea.hbm %s1940_s0, %s1200_s13  ;;  %s245_s18 = sshll.u32 %s238_s17, 4  ;;  %s1572_s18 = int_to_ptr.vmem [resolvable:$true] %s245_s18 }
   0xd   : > { %p1574_p8 = pnand %p1332_p6, %p36_p4  ;;  %s235_s20 = scalar_lea.sflag [#allocation5], %s234_s11 }
   0xe   : > { %s1407_s21 = scalar_lea.hbm %s1570_s16, 128  ;;  %s1412_s24 = scalar_lea.hbm %s1940_s0, 256 }
   0xf   : > { %p1408_p11 = scmp.ne.s32.totalorder %s1570_s16, %s1407_s21  ;;  %p1409_p12 = pneg %p1574_p8 }
  0x10   : > { %p1413_p1 = scmp.lt.u32.totalorder %s1570_s16, %s1940_s0  ;;  %p1414_p2 = scmp.lt.u32.totalorder %s1412_s24, %s1407_s21 }
  0x11   : > { %p1410_p13 = pnand %p1409_p12, %p1408_p11  ;;  %p1416_p4 = scmp.lt.u32.totalorder %s1407_s21, %s1570_s16 }
  0x12   : > { %p1415_p3 = por %p1414_p2, %p1413_p1 }
  0x13   : > { %p1411_p0 = pneg %p1410_p13 }
  0x14   : > { %p1417_p5 = por %p1416_p4, %p1415_p3 }
  0x16   : > { %p1418_p6 = pnand %p1417_p5, %p1411_p0 }
  0x18   : > { %1421 = shalt.err (!%p1418_p6)
}
  0x19   : > { %s1422_s11 = scalar_lea.vmem %s1572_s18, 128  ;;  %s1473_s12 = smov [#allocation4]  }
  0x1a   : > { %p1423_p11 = scmp.ne.s32.totalorder %s1572_s18, %s1422_s11  ;;  %s1427_s13 = sshll.u32 %s1473_s12, 4  ;;  %s1428_s13 = int_to_ptr.vmem [resolvable:$false] %s1427_s13 }
  0x1b   : > { %s1429_s14 = scalar_lea.vmem %s1428_s13, 256  ;;  %p1430_p10 = scmp.lt.s32.totalorder %s1572_s18, %s1428_s13 }
  0x1c   : > { %p1425_p13 = pnand %p1423_p11, %p1409_p12  ;;  %p1431_p1 = scmp.lt.s32.totalorder %s1429_s14, %s1422_s11 }
  0x1e   : > { %p1426_p9 = pneg %p1425_p13  ;;  %p1432_p2 = por %p1431_p1, %p1430_p10 }
  0x20   : > { %p1433_p3 = pnand %p1432_p2, %p1426_p9 }
  0x22   : > { %1436 = shalt.err (!%p1433_p3)
}
  0x23   : > { %1331 = dma.hbm_to_vmem [thread:$0]  (!%p1574_p8), %s1570_s16, 128, %s1572_s18, %s235_s20  }
  0x24   : > { %p1950_p0 = scmp.lt.s32.totalorder %s1471_s27, 3  ;;  %p1951_p4 = scmp.ge.s32.totalorder %s1471_s27, 1 }
  0x26   : > { %p251_p12 = pnand %p1951_p4, %p1950_p0 }
  0x27   : > { %s256_s15 = sand.u32 (!%p251_p12), 1, %s1463_s25  }
  0x28   : > { %254 = sbr.rel (%p251_p12) target bundleno = 2319 (0x90f), region = 48  ;;  %s1202_s17 = sshll.u32 (!%p251_p12), %s256_s15, 3 }
  0x29   : > { %s257_s21 = scalar_lea.sflag (!%p251_p12), [#allocation5], %s256_s15  ;;  %s260_s22 = scalar_lea.vmem (!%p251_p12), [#allocation4], %s1202_s17 }
  0x2f   : > { %1454 = dma.done.wait (%p1561_p7), %s257_s21, 128  }
  0x30   : > { %1456 = vsyncadd (%p1561_p7), %s257_s21, 4294967168  ;;  %v1474_v0 = vmov 0.0|0.0   ;;  %vm1475_vm0 = vmmov 0   ;;  %v1476_v1 = vmov 0.0   ;;  %v297_v2 = vld [vmem:[%s1943_s3] sm:$0xff]  ;;  %v298_v3 = vld [vmem:[%s1943_s3 + $0x8] sm:$0xff]  ;;  %v506_v39 = vlaneseq }
  0x31   : > { %1311 = vmatprep.subr.bf16.mxu0 %v1474_v0  ;;  %1256 = vmatprep.mubr.msk.f32.mxu0 %vm1475_vm0, %v1476_v1  ;;  %v299_v4 = vld [vmem:[%s1943_s3 + $0x10] sm:$0xff]  ;;  %v1312_v5 = vpack.c.bf16 %v298_v3, %v297_v2  ;;  %v300_v6 = vld [vmem:[%s1943_s3 + $0x18] sm:$0xff]  ;;  %vm308_vm1 = vcmask 261120   ;;  %v389_v9 = vld [vmem:[%s1945_s5] sm:$0xff]  ;;  %vm473_vm2 = vcmask 23552   ;;  %v1477_v34 = vmov 0  }
  0x32   : > { %1317 = vmatprep.subr.bf16.mxu1 %v1474_v0  ;;  %1267 = vmatprep.mubr.msk.f32.mxu1 %vm1475_vm0, %v1476_v1  ;;  %v1315_v7 = vpack.c.bf16 %v300_v6, %v299_v4  ;;  %v296_v8 = vld [vmem:[%s260_s22] sm:$0xff]  ;;  %v390_v10 = vld [vmem:[%s1945_s5 + $0x8] sm:$0xff]  ;;  %v1204_v15 = vld [vmem:[%s1944_s4] ss:$0 sm:$0xff]  ;;  %v1478_v35 = vmov 2   ;;  %v507_v40 = vshrl.u32 %v506_v39, 7 }
  0x33   : > { %1313 = vmatpush3.bf16.msra.mxu0 %v1312_v5  ;;  %v1318_v11 = vpack.c.bf16 %v390_v10, %v389_v9  ;;  %v391_v12 = vld [vmem:[%s1945_s5 + $0x10] sm:$0xff]  ;;  %v392_v13 = vld [vmem:[%s1945_s5 + $0x18] sm:$0xff]  ;;  %v1207_v24 = vld [vmem:[%s1946_s6] ss:$0 sm:$0xff]  ;;  %1377 = vset.pattern.permute.xlu0 %v1477_v34  ;;  %s1479_s23 = smov 126   ;;  %s1480_s24 = smov 127  }
  0x34   : > { %1314 = vmatprep.subr.bf16.mxu0 %v1474_v0  ;;  %v1321_v14 = vpack.c.bf16 %v392_v13, %v391_v12  ;;  %1376 = vset.pattern.permute.xlu1 %v1478_v35  ;;  %v486_v41 = vld [vmem:[%s1941_s1] sm:$0x1]  ;;  %v508_v45 = vsub.s32 0, %v507_v40  ;;  %v1481_v47 = vmov 1   ;;  %s1482_s30 = smov 99   ;;  %s1483_s8 = smov 38  }
  0x35   : > { %1319 = vmatpush3.bf16.msra.mxu1 %v1318_v11  ;;  %v487_v42 = vld [vmem:[%s1942_s2] sm:$0x1]  ;;  %s1484_s11 = smov 10   ;;  %vm516_vm3 = vcmask 809984   ;;  %v1695_v55 = vsub.f32 1.0, %v486_v41  ;;  %vm525_vm4 = vcmask 80896  }
  0x36   : > { %1320 = vmatprep.subr.bf16.mxu1 %v1474_v0  ;;  %v1672_v44 = vmul.f32 %v487_v42, %v486_v41  ;;  %v1699_v60 = vsub.f32 1.0, %v487_v42  ;;  %vm503_vm5 = vcmask 811008   ;;  %vm945_vm6 = vcmask 64512   ;;  %p291_p7 = scmp.lt.s32.totalorder %s1544_s28, 1 }
  0x37   : > { %1316 = vmatpush3.bf16.msra.mxu0 %v1315_v7  ;;  %vm1127_vm7 = vcmask 257024  }
  0x38   : > { %1270 = vmatprep.subr.mxu0 %v1476_v1  ;;  %v509_v46 = vrot.slane %v1672_v44, %v508_v45  ;;  %s1957_s28 = smov (!%p291_p7, %s1544_s28), 1 }
  0x39   : > { %1322 = vmatpush3.bf16.msra.mxu1 %v1321_v14  ;;  %s1325_s12 = smul.u32 104, %s1957_s28 }
  0x3a   : > { %1257 = vmatmul.mubr.msk.f32.vlgmr.msra.gmra.mrb[0].mxu0 %vm308_vm1, %v296_v8  ;;  %1323 = vmatprep.subr.mxu1 %v1476_v1 }
  0x3b   : > { %1271 = vmatpush3.msra.mxu0 %v296_v8  ;;  %1272 = vmatprep.mubr.msk.f32.mxu0 %vm1475_vm0, %v1476_v1  ;;  %s1900_s15 = scalar_lea.vmem %s1947_s7, %s1325_s12 }
 0x10d   : > { %v378_v16 = vpop.f32.mrb[0].mxu0 }
 0x10e   : > { %v379_v17 = vadd.f32 %v1204_v15, %v378_v16  ;;  %v1258_v18 = vpop.f32.mrb[1].mxu0 }
 0x110   : > { %v1206_v19 = vmul.f32 -1.442695, %v379_v17 }
 0x112   : > { %1399 = vpow2.f32 %v1206_v19 }
 0x11c   : > { %v1400_v20 = vpop.eup %1399 }
 0x11d   : > { %v385_v21 = vadd.f32 1.0, %v1400_v20 }
 0x11f   : > { %1401 = vrcp.f32 %v385_v21 }
 0x129   : > { %v1402_v22 = vpop.eup %1401 }
 0x12a   : > { %v388_v23 = vmul.f32 %v1402_v22, %v379_v17 }
 0x12c   : > { %1268 = vmatmul.mubr.msk.f32.vlgmr.msra.gmra.mrb[0].mxu1 %vm308_vm1, %v388_v23 }
 0x12d   : > { %1324 = vmatpush3.msra.mxu1 %v296_v8  ;;  %1293 = vmatprep.mubr.msk.f32.mxu1 %vm1475_vm0, %v1476_v1 }
 0x1ff   : > { %v469_v25 = vpop.f32.mrb[0].mxu1 }
 0x200   : > { %v470_v26 = vadd.f32 %v1207_v24, %v469_v25  ;;  %v1269_v27 = vpop.f32.mrb[1].mxu1 }
 0x202   : > { %v474_v28 = vsel %vm473_vm2, %v470_v26, -inf }
 0x203   : > { %475 = vmax.xlane.f32.xlu0 %v474_v28 }
 0x290   : > { %v476_v29 = vpop.xlane.xlu0 %475 }
 0x291   : > { %v477_v30 = vsub.f32 %v470_v26, %v476_v29 }
 0x293   : > { %v478_v31 = vmul.f32 1.442695, %v477_v30 }
 0x295   : > { %1403 = vpow2.f32 %v478_v31 }
 0x29f   : > { %v1404_v32 = vpop.eup %1403 }
 0x2a0   : > { %v480_v33 = vsel %vm473_vm2, %v1404_v32, 0.0 }
 0x2a1   : > { %481 = vadd.xlane.f32.xlu0 %v480_v33 }
 0x32e   : > { %v482_v36 = vpop.xlane.xlu0 %481 }
 0x32f   : > { %1405 = vrcp.f32 %v482_v36 }
 0x339   : > { %v1406_v37 = vpop.eup %1405 }
 0x33a   : > { %v484_v38 = vmul.f32 %v1406_v37, %v1404_v32 }
 0x33c   : > { %485 = vst.msk [vmem:[#allocation2] sm:$0xff] %vm473_vm2, %v484_v38 }
 0x343   : > { %v1667_v43 = vld [vmem:[#allocation2 + $0x7] sm:$0x1]  ;;  %v1685_v50 = vld [vmem:[#allocation2 + $0x6] sm:$0x1]  ;;  %v1715_v11 = vld [vmem:[#allocation2 + $0x5] sm:$0x1] }
 0x344   : > { %539 = vperm.xlu0 %1377, %v1667_v43   ;;  %545 = vrot.lane.b32.xlu1 %v1667_v43, %s1479_s23  ;;  %v1739_v33 = vld [vmem:[#allocation2 + $0x4] sm:$0x1] }
 0x348   : > { %534 = vperm.xlu1 %1376, %v1667_v43  }
 0x34c   : > { %510 = vrot.lane.b32.xlu1 %v509_v46, %s1480_s24 }
 0x34d   : > { %1378 = vset.pattern.permute.xlu1 %v1481_v47 }
 0x350   : > { %513 = vrot.lane.b32.xlu1 %v509_v46, %s1482_s30 }
 0x354   : > { %519 = vrot.lane.b32.xlu1 %v509_v46, %s1483_s8 }
 0x358   : > { %529 = vperm.xlu1 %1378, %v1667_v43  }
 0x35c   : > { %1379 = vset.pattern.permute.xlu1 %v1477_v34 }
 0x3b6   : > { %v546_v48 = vpop.permute.xlu1 %545 }
 0x3b7   : > { %v548_v49 = vadd.f32 %v546_v48, %v1667_v43 }
 0x3b9   : > { %551 = vperm.xlu1 %1379, %v548_v49  }
 0x3bd   : > { %522 = vrot.lane.b32.xlu1 %v509_v46, %s1484_s11 }
 0x3be   : > { %1380 = vset.pattern.permute.xlu1 %v1478_v35 }
 0x3c1   : > { %604 = vrot.lane.b32.xlu1 %v1685_v50, %s1479_s23 }
 0x3c3   : > { %v540_v61 = vpop.permute.xlu0 %539 }
 0x3c5   : > { %593 = vperm.xlu1 %1380, %v1685_v50  }
 0x3c7   : > { %v535_v51 = vpop.permute.xlu1 %534 }
 0x3c8   : > { %v537_v2 = vmul.f32 %v535_v51, %v1672_v44 }
 0x3c9   : > { %1381 = vset.pattern.permute.xlu1 %v1477_v34 }
 0x3ca   : > { %598 = vperm.xlu1 %1381, %v1685_v50  }
 0x3cb   : > { %v511_v52 = vpop.permute.xlu1 %510 }
 0x3ce   : > { %1382 = vset.pattern.permute.xlu1 %v1481_v47 }
 0x3cf   : > { %588 = vperm.xlu1 %1382, %v1685_v50   ;;  %v514_v53 = vpop.permute.xlu1 %513 }
 0x3d0   : > { %v517_v57 = vsel %vm516_vm3, %v511_v52, %v514_v53 }
 0x3d1   : > { %v518_v58 = vmul.f32 %v517_v57, %v1695_v55 }
 0x3d3   : > { %1383 = vset.pattern.permute.xlu1 %v1477_v34  ;;  %v520_v54 = vpop.permute.xlu1 %519  ;;  %v542_v62 = vmul.f32 %v540_v61, %v518_v58 }
 0x3d5   : > { %v543_v4 = vadd.f32 %v542_v62, %v537_v2 }
 0x3d7   : > { %v530_v56 = vpop.permute.xlu1 %529 }
 0x438   : > { %v552_v59 = vpop.permute.xlu1 %551 }
 0x439   : > { %v554_v9 = vmul.f32 %v552_v59, %v1672_v44 }
 0x43c   : > { %v523_v63 = vpop.permute.xlu1 %522 }
 0x43d   : > { %v526_v0 = vsel %vm525_vm4, %v520_v54, %v523_v63  ;;  %v1762_v63 = vld [vmem:[#allocation2 + $0x3] sm:$0x1] }
 0x43e   : > { %v527_v3 = vmul.f32 %v526_v0, %v1699_v60 }
 0x440   : > { %v532_v5 = vmul.f32 %v530_v56, %v527_v3  ;;  %v605_v6 = vpop.permute.xlu1 %604 }
 0x441   : > { %v607_v7 = vadd.f32 %v605_v6, %v1685_v50 }
 0x442   : > { %v1705_v8 = vadd.f32 %v543_v4, %v532_v5  ;;  %v555_v10 = vadd.f32 %v554_v9, %v532_v5 }
 0x443   : > { %610 = vperm.xlu1 %1383, %v607_v7  }
 0x444   : > { %573 = vrot.lane.b32.xlu0 %v1705_v8, %s1482_s30  ;;  %v594_v12 = vpop.permute.xlu1 %593 }
 0x445   : > { %v596_v26 = vmul.f32 %v594_v12, %v1705_v8 }
 0x447   : > { %570 = vrot.lane.b32.xlu1 %v1705_v8, %s1480_s24 }
 0x448   : > { %579 = vrot.lane.b32.xlu0 %v555_v10, %s1483_s8  ;;  %1384 = vset.pattern.permute.xlu1 %v1478_v35 }
 0x449   : > { %v599_v14 = vpop.permute.xlu1 %598 }
 0x44b   : > { %582 = vrot.lane.b32.xlu1 %v555_v10, %s1484_s11 }
 0x44c   : > { %663 = vrot.lane.b32.xlu0 %v1715_v11, %s1479_s23 }
 0x44e   : > { %v589_v16 = vpop.permute.xlu1 %588 }
 0x44f   : > { %652 = vperm.xlu1 %1384, %v1715_v11  }
 0x450   : > { %657 = vperm.xlu0 %1377, %v1715_v11  }
 0x453   : > { %1385 = vset.pattern.permute.xlu1 %v1481_v47 }
 0x454   : > { %647 = vperm.xlu1 %1385, %v1715_v11  }
 0x458   : > { %1387 = vset.pattern.permute.xlu1 %v1477_v34 }
 0x4b6   : > { %v574_v13 = vpop.permute.xlu0 %573 }
 0x4ba   : > { %v580_v15 = vpop.permute.xlu0 %579 }
 0x4be   : > { %v664_v17 = vpop.permute.xlu0 %663 }
 0x4bf   : > { %v666_v18 = vadd.f32 %v664_v17, %v1715_v11 }
 0x4c1   : > { %669 = vperm.xlu0 %1377, %v666_v18  }
 0x4c2   : > { %v611_v19 = vpop.permute.xlu1 %610 }
 0x4c3   : > { %v613_v31 = vmul.f32 %v611_v19, %v555_v10 }
 0x4c5   : > { %1386 = vset.pattern.permute.xlu0 %v1478_v35 }
 0x4c6   : > { %v571_v20 = vpop.permute.xlu1 %570 }
 0x4c7   : > { %v576_v21 = vsel %vm516_vm3, %v571_v20, %v574_v13 }
 0x4c8   : > { %v577_v22 = vmul.f32 %v576_v21, %v1695_v55 }
 0x4ca   : > { %v601_v23 = vmul.f32 %v599_v14, %v577_v22  ;;  %v583_v24 = vpop.permute.xlu1 %582 }
 0x4cb   : > { %v585_v25 = vsel %vm525_vm4, %v580_v15, %v583_v24  ;;  %v1783_v24 = vld [vmem:[#allocation2 + $0x2] sm:$0x1] }
 0x4cc   : > { %v586_v27 = vmul.f32 %v585_v25, %v1699_v60  ;;  %v602_v28 = vadd.f32 %v601_v23, %v596_v26 }
 0x4ce   : > { %v591_v29 = vmul.f32 %v589_v16, %v586_v27  ;;  %v653_v36 = vpop.permute.xlu1 %652 }
 0x4cf   : > { %v658_v37 = vpop.permute.xlu0 %657 }
 0x4d0   : > { %v1731_v30 = vadd.f32 %v602_v28, %v591_v29  ;;  %v614_v32 = vadd.f32 %v613_v31, %v591_v29 }
 0x4d2   : > { %632 = vrot.lane.b32.xlu1 %v1731_v30, %s1482_s30  ;;  %629 = vrot.lane.b32.xlu0 %v1731_v30, %s1480_s24  ;;  %v655_v52 = vmul.f32 %v653_v36, %v1731_v30 }
 0x4d3   : > { %v648_v38 = vpop.permute.xlu1 %647 }
 0x4d6   : > { %638 = vrot.lane.b32.xlu1 %v614_v32, %s1483_s8  ;;  %641 = vrot.lane.b32.xlu0 %v614_v32, %s1484_s11 }
 0x4da   : > { %722 = vrot.lane.b32.xlu1 %v1739_v33, %s1479_s23  ;;  %711 = vperm.xlu0 %1386, %v1739_v33  }
 0x4de   : > { %716 = vperm.xlu1 %1387, %v1739_v33   ;;  %1389 = vset.pattern.permute.xlu0 %v1477_v34 }
 0x4e2   : > { %1388 = vset.pattern.permute.xlu1 %v1481_v47 }
 0x4e3   : > { %706 = vperm.xlu1 %1388, %v1739_v33  }
 0x4e7   : > { %1390 = vset.pattern.permute.xlu1 %v1478_v35 }
 0x540   : > { %v670_v39 = vpop.permute.xlu0 %669 }
 0x541   : > { %v672_v54 = vmul.f32 %v670_v39, %v614_v32 }
 0x544   : > { %v630_v40 = vpop.permute.xlu0 %629  ;;  %v633_v41 = vpop.permute.xlu1 %632 }
 0x545   : > { %v635_v42 = vsel %vm516_vm3, %v630_v40, %v633_v41 }
 0x546   : > { %v636_v45 = vmul.f32 %v635_v42, %v1695_v55 }
 0x548   : > { %v660_v46 = vmul.f32 %v658_v37, %v636_v45  ;;  %v642_v48 = vpop.permute.xlu0 %641  ;;  %v639_v49 = vpop.permute.xlu1 %638 }
 0x549   : > { %v644_v51 = vsel %vm525_vm4, %v639_v49, %v642_v48 }
 0x54a   : > { %v645_v53 = vmul.f32 %v644_v51, %v1699_v60  ;;  %v661_v56 = vadd.f32 %v660_v46, %v655_v52 }
 0x54c   : > { %v650_v57 = vmul.f32 %v648_v38, %v645_v53  ;;  %v723_v61 = vpop.permute.xlu1 %722  ;;  %v851_v53 = vld [vmem:[#allocation2 + $0x1] sm:$0x1] }
 0x54d   : > { %v725_v62 = vadd.f32 %v723_v61, %v1739_v33 }
 0x54e   : > { %v1754_v58 = vadd.f32 %v661_v56, %v650_v57  ;;  %v673_v59 = vadd.f32 %v672_v54, %v650_v57  ;;  %v899_v56 = vld [vmem:[#allocation2] sm:$0x1] }
 0x550   : > { %697 = vrot.lane.b32.xlu1 %v673_v59, %s1483_s8  ;;  %688 = vrot.lane.b32.xlu0 %v1754_v58, %s1480_s24 }
 0x554   : > { %691 = vrot.lane.b32.xlu1 %v1754_v58, %s1482_s30  ;;  %728 = vperm.xlu0 %1389, %v725_v62  }
 0x558   : > { %700 = vrot.lane.b32.xlu1 %v673_v59, %s1484_s11  ;;  %781 = vrot.lane.b32.xlu0 %v1762_v63, %s1479_s23 }
 0x559   : > { %v712_v3 = vpop.permute.xlu0 %711 }
 0x55a   : > { %v714_v14 = vmul.f32 %v712_v3, %v1754_v58 }
 0x55c   : > { %770 = vperm.xlu1 %1390, %v1762_v63   ;;  %775 = vperm.xlu0 %1389, %v1762_v63  }
 0x55d   : > { %v717_v0 = vpop.permute.xlu1 %716 }
 0x560   : > { %1391 = vset.pattern.permute.xlu1 %v1481_v47 }
 0x561   : > { %765 = vperm.xlu1 %1391, %v1762_v63  }
 0x562   : > { %v707_v2 = vpop.permute.xlu1 %706 }
 0x565   : > { %1392 = vset.pattern.permute.xlu1 %v1477_v34 }
 0x5c2   : > { %v698_v4 = vpop.permute.xlu1 %697  ;;  %v689_v5 = vpop.permute.xlu0 %688 }
 0x5c6   : > { %v692_v6 = vpop.permute.xlu1 %691 }
 0x5c7   : > { %v694_v7 = vsel %vm516_vm3, %v689_v5, %v692_v6 }
 0x5c8   : > { %v695_v9 = vmul.f32 %v694_v7, %v1695_v55 }
 0x5ca   : > { %v719_v10 = vmul.f32 %v717_v0, %v695_v9  ;;  %v701_v12 = vpop.permute.xlu1 %700 }
 0x5cb   : > { %v703_v13 = vsel %vm525_vm4, %v698_v4, %v701_v12 }
 0x5cc   : > { %v704_v15 = vmul.f32 %v703_v13, %v1699_v60  ;;  %v720_v16 = vadd.f32 %v719_v10, %v714_v14 }
 0x5ce   : > { %v709_v17 = vmul.f32 %v707_v2, %v704_v15 }
 0x5d0   : > { %v1777_v18 = vadd.f32 %v720_v16, %v709_v17 }
 0x5d2   : > { %750 = vrot.lane.b32.xlu1 %v1777_v18, %s1482_s30 }
 0x5d3   : > { %v729_v19 = vpop.permute.xlu0 %728 }
 0x5d4   : > { %v731_v20 = vmul.f32 %v729_v19, %v673_v59 }
 0x5d6   : > { %v732_v21 = vadd.f32 %v731_v20, %v709_v17 }
 0x5d7   : > { %v782_v22 = vpop.permute.xlu0 %781 }
 0x5d8   : > { %v784_v23 = vadd.f32 %v782_v22, %v1762_v63  ;;  %756 = vrot.lane.b32.xlu1 %v732_v21, %s1483_s8 }
 0x5da   : > { %787 = vperm.xlu0 %1389, %v784_v23  }
 0x5db   : > { %v771_v25 = vpop.permute.xlu1 %770  ;;  %v776_v32 = vpop.permute.xlu0 %775 }
 0x5dc   : > { %840 = vrot.lane.b32.xlu1 %v1783_v24, %s1479_s23  ;;  %v773_v45 = vmul.f32 %v771_v25, %v1777_v18 }
 0x5de   : > { %747 = vrot.lane.b32.xlu0 %v1777_v18, %s1480_s24 }
 0x5e0   : > { %834 = vperm.xlu1 %1392, %v1783_v24   ;;  %v766_v26 = vpop.permute.xlu1 %765 }
 0x5e2   : > { %759 = vrot.lane.b32.xlu0 %v732_v21, %s1484_s11 }
 0x5e4   : > { %1393 = vset.pattern.permute.xlu1 %v1481_v47 }
 0x5e5   : > { %824 = vperm.xlu1 %1393, %v1783_v24  }
 0x5e9   : > { %558 = vrot.lane.b32.xlu1 %v1685_v50, %s1480_s24 }
 0x5ea   : > { %1395 = vset.pattern.permute.xlu1 %v1477_v34 }
 0x644   : > { %v751_v27 = vpop.permute.xlu1 %750 }
 0x64a   : > { %v757_v28 = vpop.permute.xlu1 %756 }
 0x64e   : > { %v841_v29 = vpop.permute.xlu1 %840 }
 0x64f   : > { %v843_v31 = vadd.f32 %v841_v29, %v1783_v24 }
 0x651   : > { %846 = vperm.xlu0 %1389, %v843_v31  }
 0x655   : > { %1394 = vset.pattern.permute.xlu0 %v1478_v35 }
 0x656   : > { %829 = vperm.xlu0 %1394, %v1783_v24  }
 0x659   : > { %v788_v36 = vpop.permute.xlu0 %787 }
 0x65a   : > { %493 = vrot.lane.b32.xlu0 %v1667_v43, %s1480_s24  ;;  %v790_v35 = vmul.f32 %v788_v36, %v732_v21 }
 0x65d   : > { %v748_v37 = vpop.permute.xlu0 %747 }
 0x65e   : > { %v753_v38 = vsel %vm516_vm3, %v748_v37, %v751_v27 }
 0x65f   : > { %v754_v39 = vmul.f32 %v753_v38, %v1695_v55  ;;  %v835_v54 = vpop.permute.xlu1 %834 }
 0x661   : > { %v778_v40 = vmul.f32 %v776_v32, %v754_v39  ;;  %v760_v41 = vpop.permute.xlu0 %759 }
 0x662   : > { %v762_v42 = vsel %vm525_vm4, %v757_v28, %v760_v41 }
 0x663   : > { %v763_v46 = vmul.f32 %v762_v42, %v1699_v60  ;;  %v779_v48 = vadd.f32 %v778_v40, %v773_v45 }
 0x664   : > { %v825_v57 = vpop.permute.xlu1 %824 }
 0x665   : > { %v768_v49 = vmul.f32 %v766_v26, %v763_v46 }
 0x667   : > { %v1806_v51 = vadd.f32 %v779_v48, %v768_v49  ;;  %v791_v52 = vadd.f32 %v790_v35, %v768_v49 }
 0x668   : > { %v559_v59 = vpop.permute.xlu1 %558 }
 0x669   : > { %815 = vrot.lane.b32.xlu1 %v791_v52, %s1483_s8  ;;  %806 = vrot.lane.b32.xlu0 %v1806_v51, %s1480_s24  ;;  %v561_v61 = vadd.f32 %v559_v59, %v1685_v50 }
 0x66d   : > { %818 = vrot.lane.b32.xlu1 %v791_v52, %s1484_s11  ;;  %617 = vrot.lane.b32.xlu0 %v1715_v11, %s1480_s24 }
 0x671   : > { %809 = vrot.lane.b32.xlu1 %v1806_v51, %s1482_s30  ;;  %735 = vrot.lane.b32.xlu0 %v1762_v63, %s1480_s24 }
 0x675   : > { %676 = vrot.lane.b32.xlu1 %v1739_v33, %s1480_s24  ;;  %853 = vrot.lane.b32.xlu0 %v851_v53, %s1480_s24 }
 0x679   : > { %794 = vrot.lane.b32.xlu1 %v1783_v24, %s1480_s24  ;;  %888 = vperm.xlu0 %1394, %v851_v53  }
 0x67d   : > { %901 = vrot.lane.b32.xlu1 %v899_v56, %s1480_s24  ;;  %1397 = vset.pattern.permute.xlu0 %v1477_v34 }
 0x681   : > { %893 = vperm.xlu1 %1395, %v851_v53  }
 0x685   : > { %1396 = vset.pattern.permute.xlu1 %v1481_v47 }
 0x686   : > { %883 = vperm.xlu1 %1396, %v851_v53  }
 0x68a   : > { %1398 = vset.pattern.permute.xlu1 %v1477_v34 }
 0x68b   : > { %564 = vperm.xlu1 %1398, %v561_v61  }
 0x6d0   : > { %v847_v62 = vpop.permute.xlu0 %846 }
 0x6d1   : > { %v849_v25 = vmul.f32 %v847_v62, %v791_v52 }
 0x6d5   : > { %v830_v0 = vpop.permute.xlu0 %829 }
 0x6d6   : > { %v832_v15 = vmul.f32 %v830_v0, %v1806_v51 }
 0x6d9   : > { %v494_v2 = vpop.permute.xlu0 %493 }
 0x6da   : > { %v496_v3 = vadd.f32 %v494_v2, %v1667_v43 }
 0x6db   : > { %v816_v4 = vpop.permute.xlu1 %815 }
 0x6dc   : > { %499 = vperm.xlu0 %1397, %v496_v3  }
 0x6dd   : > { %v807_v5 = vpop.permute.xlu0 %806 }
 0x6df   : > { %v819_v6 = vpop.permute.xlu1 %818 }
 0x6e0   : > { %v821_v50 = vsel %vm525_vm4, %v816_v4, %v819_v6 }
 0x6e1   : > { %v618_v7 = vpop.permute.xlu0 %617  ;;  %v822_v16 = vmul.f32 %v821_v50, %v1699_v60 }
 0x6e2   : > { %v620_v9 = vadd.f32 %v618_v7, %v1715_v11 }
 0x6e3   : > { %v810_v47 = vpop.permute.xlu1 %809  ;;  %v827_v22 = vmul.f32 %v825_v57, %v822_v16 }
 0x6e4   : > { %v812_v10 = vsel %vm516_vm3, %v807_v5, %v810_v47  ;;  %623 = vperm.xlu1 %1398, %v620_v9  }
 0x6e5   : > { %v813_v34 = vmul.f32 %v812_v10, %v1695_v55  ;;  %v736_v12 = vpop.permute.xlu0 %735  ;;  %v850_v26 = vadd.f32 %v849_v25, %v827_v22 }
 0x6e6   : > { %v738_v13 = vadd.f32 %v736_v12, %v1762_v63 }
 0x6e7   : > { %v837_v14 = vmul.f32 %v835_v54, %v813_v34  ;;  %v677_v43 = vpop.permute.xlu1 %676 }
 0x6e8   : > { %v679_v17 = vadd.f32 %v677_v43, %v1739_v33  ;;  %741 = vperm.xlu1 %1398, %v738_v13  }
 0x6e9   : > { %v854_v11 = vpop.permute.xlu0 %853  ;;  %v838_v19 = vadd.f32 %v837_v14, %v832_v15 }
 0x6ea   : > { %v856_v20 = vadd.f32 %v854_v11, %v851_v53  ;;  %682 = vperm.xlu0 %1397, %v679_v17  }
 0x6eb   : > { %v795_v21 = vpop.permute.xlu1 %794  ;;  %v839_v63 = vadd.f32 %v838_v19, %v827_v22 }
 0x6ec   : > { %v797_v23 = vadd.f32 %v795_v21, %v1783_v24  ;;  %859 = vperm.xlu1 %1398, %v856_v20  }
 0x6ee   : > { %800 = vperm.xlu0 %1397, %v797_v23  }
 0x6ef   : > { %v902_v33 = vpop.permute.xlu1 %901 }
 0x6f0   : > { %868 = vrot.lane.b32.xlu1 %v839_v63, %s1482_s30  ;;  %v904_v27 = vadd.f32 %v902_v33, %v899_v56 }
 0x6f2   : > { %874 = vrot.lane.b32.xlu0 %v850_v26, %s1483_s8 }
 0x6f4   : > { %877 = vrot.lane.b32.xlu1 %v850_v26, %s1484_s11 }
 0x6f6   : > { %865 = vrot.lane.b32.xlu0 %v839_v63, %s1480_s24 }
 0x6f8   : > { %v889_v32 = vpop.permute.xlu0 %888 }
 0x6f9   : > { %v891_v56 = vmul.f32 %v889_v32, %v839_v63 }
 0x6fa   : > { %907 = vperm.xlu0 %1397, %v904_v27  }
 0x700   : > { %v894_v28 = vpop.permute.xlu1 %893 }
 0x705   : > { %v884_v29 = vpop.permute.xlu1 %883 }
 0x70a   : > { %v565_v24 = vpop.permute.xlu1 %564 }
 0x70b   : > { %v567_v31 = vmul.f32 %v565_v24, %v1705_v8 }
 0x70d   : > { %568 = vst.msk [vmem:[#allocation3 + $0x6] sm:$0x1] %vm503_vm5, %v567_v31 }
 0x75b   : > { %v500_v36 = vpop.permute.xlu0 %499 }
 0x75c   : > { %v502_v37 = vmul.f32 %v500_v36, %v1672_v44 }
 0x75e   : > { %504 = vst.msk [vmem:[#allocation3 + $0x7] sm:$0x1] %vm503_vm5, %v502_v37 }
 0x763   : > { %v624_v38 = vpop.permute.xlu1 %623 }
 0x764   : > { %v626_v39 = vmul.f32 %v624_v38, %v1731_v30 }
 0x766   : > { %627 = vst.msk [vmem:[#allocation3 + $0x5] sm:$0x1] %vm503_vm5, %v626_v39 }
 0x767   : > { %v742_v40 = vpop.permute.xlu1 %741 }
 0x768   : > { %v744_v41 = vmul.f32 %v742_v40, %v1777_v18 }
 0x769   : > { %v683_v42 = vpop.permute.xlu0 %682 }
 0x76a   : > { %745 = vst.msk [vmem:[#allocation3 + $0x3] sm:$0x1] %vm503_vm5, %v744_v41  ;;  %v685_v8 = vmul.f32 %v683_v42, %v1754_v58 }
 0x76b   : > { %v860_v45 = vpop.permute.xlu1 %859 }
 0x76c   : > { %686 = vst.msk [vmem:[#allocation3 + $0x4] sm:$0x1] %vm503_vm5, %v685_v8  ;;  %v862_v46 = vmul.f32 %v860_v45, %v839_v63 }
 0x76d   : > { %v801_v44 = vpop.permute.xlu0 %800 }
 0x76e   : > { %863 = vst.msk [vmem:[#allocation3 + $0x1] sm:$0x1] %vm503_vm5, %v862_v46  ;;  %v803_v35 = vmul.f32 %v801_v44, %v1806_v51 }
 0x76f   : > { %v869_v30 = vpop.permute.xlu1 %868 }
 0x770   : > { %804 = vst.msk [vmem:[#allocation3 + $0x2] sm:$0x1] %vm503_vm5, %v803_v35 }
 0x771   : > { %v875_v48 = vpop.permute.xlu0 %874 }
 0x773   : > { %v878_v49 = vpop.permute.xlu1 %877 }
 0x774   : > { %v880_v18 = vsel %vm525_vm4, %v875_v48, %v878_v49 }
 0x775   : > { %v866_v52 = vpop.permute.xlu0 %865  ;;  %v881_v58 = vmul.f32 %v880_v18, %v1699_v60 }
 0x776   : > { %v871_v53 = vsel %vm516_vm3, %v866_v52, %v869_v30 }
 0x777   : > { %v872_v54 = vmul.f32 %v871_v53, %v1695_v55  ;;  %v886_v59 = vmul.f32 %v884_v29, %v881_v58 }
 0x779   : > { %v896_v57 = vmul.f32 %v894_v28, %v872_v54  ;;  %v908_v51 = vpop.permute.xlu0 %907 }
 0x77b   : > { %v897_v61 = vadd.f32 %v896_v57, %v891_v56 }
 0x77d   : > { %v898_v62 = vadd.f32 %v897_v61, %v886_v59 }
 0x77f   : > { %v910_v0 = vmul.f32 %v908_v51, %v898_v62 }
 0x781   : > { %911 = vst.msk [vmem:[#allocation3] sm:$0x1] %vm503_vm5, %v910_v0 }
 0x788   : > { %v912_v2 = vld [vmem:[#allocation3] sm:$0xff] }
 0x789   : > { %913 = vxpose.xlu1.b32.start.end [1/1] (short) (narrow) %v912_v2, 104 }
 0x809   : > { %v929_v3 = vpop.trf.xlu1 }
 0x80a   : > { %1273 = vmatmul.mubr.msk.f32.vlgmr.msra.gmra.mrb[2].mxu0 %vm945_vm6, %v929_v3 }
 0x80b   : > { %1275 = vmatprep.mubr.msk.f32.mxu0 %vm1475_vm0, %v1476_v1 }
 0x80d   : > { %v930_v60 = vpop.trf.xlu1 }
 0x80e   : > { %1276 = vmatmul.mubr.msk.f32.gmra.mrb[4].mxu0 %vm945_vm6, %v930_v60 }
 0x80f   : > { %1278 = vmatprep.mubr.msk.f32.mxu0 %vm1475_vm0, %v1476_v1 }
 0x811   : > { %v931_v55 = vpop.trf.xlu1 }
 0x812   : > { %1279 = vmatmul.mubr.msk.f32.gmra.mrb[6].mxu0 %vm945_vm6, %v931_v55 }
 0x813   : > { %1281 = vmatprep.mubr.msk.f32.mxu0 %vm1475_vm0, %v1476_v1 }
 0x815   : > { %v932_v4 = vpop.trf.xlu1 }
 0x816   : > { %1282 = vmatmul.mubr.msk.f32.gmra.mrb[8].mxu0 %vm945_vm6, %v932_v4 }
 0x817   : > { %1284 = vmatprep.mubr.msk.f32.mxu0 %vm1475_vm0, %v1476_v1 }
 0x819   : > { %v933_v5 = vpop.trf.xlu1 }
 0x81a   : > { %1285 = vmatmul.mubr.msk.f32.gmra.mrb[10].mxu0 %vm945_vm6, %v933_v5 }
 0x81b   : > { %1287 = vmatprep.mubr.msk.f32.mxu0 %vm1475_vm0, %v1476_v1 }
 0x81d   : > { %v934_v6 = vpop.trf.xlu1 }
 0x81e   : > { %1288 = vmatmul.mubr.msk.f32.gmra.mrb[12].mxu0 %vm945_vm6, %v934_v6 }
 0x81f   : > { %1290 = vmatprep.mubr.msk.f32.mxu0 %vm1475_vm0, %v1476_v1 }
 0x821   : > { %v935_v7 = vpop.trf.xlu1 }
 0x822   : > { %1291 = vmatmul.mubr.msk.f32.gmra.mrb[14].mxu0 %vm945_vm6, %v935_v7 }
 0x825   : > { %v936_v9 = vpop.trf.xlu1 }
 0x826   : > { %1294 = vmatmul.mubr.msk.f32.vlgmr.msra.gmra.mrb[2].mxu1 %vm945_vm6, %v936_v9 }
 0x827   : > { %1296 = vmatprep.mubr.msk.f32.mxu1 %vm1475_vm0, %v1476_v1 }
 0x829   : > { %v937_v47 = vpop.trf.xlu1 }
 0x82a   : > { %1297 = vmatmul.mubr.msk.f32.gmra.mrb[4].mxu1 %vm945_vm6, %v937_v47 }
 0x82b   : > { %1299 = vmatprep.mubr.msk.f32.mxu1 %vm1475_vm0, %v1476_v1 }
 0x82d   : > { %v938_v10 = vpop.trf.xlu1 }
 0x82e   : > { %1300 = vmatmul.mubr.msk.f32.gmra.mrb[6].mxu1 %vm945_vm6, %v938_v10 }
 0x82f   : > { %1302 = vmatprep.mubr.msk.f32.mxu1 %vm1475_vm0, %v1476_v1 }
 0x831   : > { %v939_v50 = vpop.trf.xlu1 }
 0x832   : > { %1303 = vmatmul.mubr.msk.f32.gmra.mrb[8].mxu1 %vm945_vm6, %v939_v50 }
 0x833   : > { %1305 = vmatprep.mubr.msk.f32.mxu1 %vm1475_vm0, %v1476_v1 }
 0x835   : > { %v940_v34 = vpop.trf.xlu1 }
 0x836   : > { %1306 = vmatmul.mubr.msk.f32.gmra.mrb[10].mxu1 %vm945_vm6, %v940_v34 }
 0x837   : > { %1308 = vmatprep.mubr.msk.f32.mxu1 %vm1475_vm0, %v1476_v1 }
 0x839   : > { %v941_v12 = vpop.trf.xlu1 }
 0x83a   : > { %1309 = vmatmul.mubr.msk.f32.gmra.mrb[12].mxu1 %vm945_vm6, %v941_v12 }
 0x8dd   : > { %v1051_v13 = vpop.f32.mrb[2].mxu0 }
 0x8de   : > { %1115 = vst.msk [vmem:[%s1900_s15] sm:$0xff] %vm308_vm1, %v1051_v13  ;;  %v1274_v1 = vpop.f32.mrb[3].mxu0 }
 0x8e1   : > { %v1056_v14 = vpop.f32.mrb[4].mxu0 }
 0x8e2   : > { %1116 = vst.msk [vmem:[%s1900_s15 + $0x8] sm:$0xff] %vm308_vm1, %v1056_v14  ;;  %v1277_v43 = vpop.f32.mrb[5].mxu0 }
 0x8e5   : > { %v1061_v15 = vpop.f32.mrb[6].mxu0 }
 0x8e6   : > { %1117 = vst.msk [vmem:[%s1900_s15 + $0x10] sm:$0xff] %vm308_vm1, %v1061_v15  ;;  %v1280_v16 = vpop.f32.mrb[7].mxu0 }
 0x8e9   : > { %v1066_v17 = vpop.f32.mrb[8].mxu0 }
 0x8ea   : > { %1118 = vst.msk [vmem:[%s1900_s15 + $0x18] sm:$0xff] %vm308_vm1, %v1066_v17  ;;  %v1283_v11 = vpop.f32.mrb[9].mxu0 }
 0x8ed   : > { %v1071_v19 = vpop.f32.mrb[10].mxu0 }
 0x8ee   : > { %1119 = vst.msk [vmem:[%s1900_s15 + $0x20] sm:$0xff] %vm308_vm1, %v1071_v19  ;;  %v1286_v20 = vpop.f32.mrb[11].mxu0 }
 0x8f1   : > { %v1076_v21 = vpop.f32.mrb[12].mxu0 }
 0x8f2   : > { %1120 = vst.msk [vmem:[%s1900_s15 + $0x28] sm:$0xff] %vm308_vm1, %v1076_v21  ;;  %v1289_v22 = vpop.f32.mrb[13].mxu0 }
 0x8f5   : > { %v1081_v23 = vpop.f32.mrb[14].mxu0 }
 0x8f6   : > { %1121 = vst.msk [vmem:[%s1900_s15 + $0x30] sm:$0xff] %vm308_vm1, %v1081_v23  ;;  %v1292_v25 = vpop.f32.mrb[15].mxu0 }
 0x8f9   : > { %v1086_v63 = vpop.f32.mrb[2].mxu1 }
 0x8fa   : > { %1122 = vst.msk [vmem:[%s1900_s15 + $0x38] sm:$0xff] %vm308_vm1, %v1086_v63  ;;  %v1295_v26 = vpop.f32.mrb[3].mxu1 }
 0x8fd   : > { %v1091_v33 = vpop.f32.mrb[4].mxu1 }
 0x8fe   : > { %1123 = vst.msk [vmem:[%s1900_s15 + $0x40] sm:$0xff] %vm308_vm1, %v1091_v33  ;;  %v1298_v27 = vpop.f32.mrb[5].mxu1 }
 0x901   : > { %v1096_v28 = vpop.f32.mrb[6].mxu1 }
 0x902   : > { %1124 = vst.msk [vmem:[%s1900_s15 + $0x48] sm:$0xff] %vm308_vm1, %v1096_v28  ;;  %v1301_v29 = vpop.f32.mrb[7].mxu1 }
 0x905   : > { %v1101_v24 = vpop.f32.mrb[8].mxu1 }
 0x906   : > { %1125 = vst.msk [vmem:[%s1900_s15 + $0x50] sm:$0xff] %vm308_vm1, %v1101_v24  ;;  %v1304_v31 = vpop.f32.mrb[9].mxu1 }
 0x909   : > { %v1106_v32 = vpop.f32.mrb[10].mxu1 }
 0x90a   : > { %1126 = vst.msk [vmem:[%s1900_s15 + $0x58] sm:$0xff] %vm308_vm1, %v1106_v32  ;;  %v1307_v36 = vpop.f32.mrb[11].mxu1 }
 0x90d   : > { %v1111_v37 = vpop.f32.mrb[12].mxu1 }
 0x90e   : > { %1128 = vst.msk [vmem:[%s1900_s15 + $0x60] sm:$0xf] %vm1127_vm7, %v1111_v37  ;;  %v1310_v38 = vpop.f32.mrb[13].mxu1 }
 0x90f PF: > { %p17_p8 = scmp.ge.s32.totalorder %s1547_s29, 4   ;;  %s1952_s24 = smov %s1463_s25 }
 0x910   : > { %s1953_s25 = smov %s1467_s26  ;;  %s1954_s26 = smov %s1557_s9 }
 0x911   : > { %s1955_s27 = smov %s1547_s29  ;;  %19 = sbr.rel (!%p17_p8) target bundleno = 3 (0x3), region = 88 }
 0x918   :  { %1150 = vsyncpa [#allocation5], 1 }
 0x919   :  { %1152 = vsyncpa [#allocation5 + $0x1], 1 }

</bundles_post_ra>
